<compile_context>
chip_gen: v5e
topology: v5e:2x2
jax: 0.10.0
libtpu: 0.0.40
codegen_flags: <defaults>
</compile_context>

<pallas_src>
import functools
import math

import jax
import jax.numpy as jnp
from jax.experimental import pallas as pl
from jax.experimental.pallas import tpu as pltpu


def gcn_kernel(x_ref, adjsum_ref, w_ref, rel_ref, bias_ref, o_ref, *, n_nodes):
    # x_ref:      (1, TN, F_in)    adjsum_ref: (1, TN, 1)
    # w_ref:      (F_in, F_out)    rel_ref:    (TN, F_out)
    # bias_ref:   (1, F_out)       o_ref:      (1, TN, F_out)
    x = x_ref[0]                    # (TN, F_in) native dtype -> MXU
    w = w_ref[...]                  # (F_in, F_out)
    hidden = jnp.dot(x, w, preferred_element_type=jnp.float32)      # (TN, F_out) f32

    adj_sum = adjsum_ref[0].astype(jnp.float32)                     # (TN, 1)
    rel = rel_ref[...].astype(jnp.float32)                          # (TN, F_out)
    bias = bias_ref[...].astype(jnp.float32)                        # (1, F_out)

    # scale = 1 / ((sum_j adj + 1) * N): one-column reciprocal on the EUP slot.
    scale = pl.reciprocal((adj_sum + 1.0) * n_nodes, approx=True)   # (TN, 1)

    out = hidden * (adj_sum * scale) + rel * scale + bias           # (TN, F_out)
    o_ref[0] = jnp.maximum(out, 0.0).astype(o_ref.dtype)


def _round_up(v, m):
    return (v + m - 1) // m * m


def graph_convolution(x, adj, weight, rel_emb, bias):
    """x: [B, N, F_in], adj: [B, N, N], weight: [F_in, F_out],
    rel_emb: [MAX_LEN, MAX_LEN, F_out], bias: [F_out] -> [B, N, F_out]."""
    B, N, F_in = x.shape
    F_out = weight.shape[1]
    assert N <= rel_emb.shape[0] and N <= rel_emb.shape[1], "N exceeds MAX_LEN"

    # adj enters only through its row-sum: reduce once in the wrapper so the
    # kernel never streams the (TN, N) adjacency block.
    adj_sum = jnp.sum(adj.astype(jnp.float32), axis=2, keepdims=True)   # (B, N, 1)
    # Only sum_j rel_emb[:N,:N,:] is used: (N, F_out) instead of (N, N, F_out).
    rel_sum = jnp.sum(rel_emb[:N, :N, :].astype(jnp.float32), axis=1)   # (N, F_out)

    # Node-row tiling: TN rows per grid step (multiple of 8, capped for VMEM).
    TN = min(512, _round_up(N, 8))
    Np = _round_up(N, TN)
    n_tiles = Np // TN

    x_p = jnp.pad(x, ((0, 0), (0, Np - N), (0, 0)))
    adjsum_p = jnp.pad(adj_sum, ((0, 0), (0, Np - N), (0, 0)))
    rel_p = jnp.pad(rel_sum, ((0, Np - N), (0, 0)))
    bias2 = bias.reshape(1, F_out)

    kernel = functools.partial(gcn_kernel, n_nodes=float(N))

    out = pl.pallas_call(
        kernel,
        out_shape=jax.ShapeDtypeStruct((B, Np, F_out), x.dtype),
        grid=(n_tiles, B),
        in_specs=[
            pl.BlockSpec((1, TN, F_in), lambda i, b: (b, i, 0)),   # x tile
            pl.BlockSpec((1, TN, 1), lambda i, b: (b, i, 0)),      # adj row-sums
            pl.BlockSpec((F_in, F_out), lambda i, b: (0, 0)),      # weight (resident)
            pl.BlockSpec((TN, F_out), lambda i, b: (i, 0)),        # rel_sum (batch-invariant)
            pl.BlockSpec((1, F_out), lambda i, b: (0, 0)),         # bias (resident)
        ],
        out_specs=pl.BlockSpec((1, TN, F_out), lambda i, b: (b, i, 0)),
        compiler_params=pltpu.CompilerParams(
            dimension_semantics=("parallel", "parallel"),
        ),
    )(x_p, adjsum_p, weight, rel_p, bias2)

    if Np != N:
        out = out[:, :N, :]
    return out


def reference_forward(x, adj, weight, rel_emb, bias):
    """Literal translation of the PyTorch forward (materializes [B,N,N,F])."""
    B, N, _ = x.shape
    inp = x[:, :, None, :]                                   # [B, N, 1, F_in]
    hidden = jnp.matmul(inp, weight)                         # [B, N, 1, F_out]
    denom = jnp.sum(adj, axis=2, keepdims=True) + 1.0        # [B, N, 1]
    adj4 = adj[..., None]                                    # [B, N, N, 1]
    output = jnp.matmul(adj4, hidden)                        # [B, N, N, F_out]
    rel = rel_emb[:N, :N, :][None]                           # [1, N, N, F_out]
    output = output + rel
    output = jnp.mean(output, axis=2)                        # [B, N, F_out]
    output = output / denom
    output = output + bias
    return jnp.maximum(output, 0.0).astype(x.dtype)


if __name__ == "__main__":
    B, N, F_IN, F_OUT = 2, 8, 16, 32
    MAX_LEN = 16

    key = jax.random.PRNGKey(0)
    k_x, k_adj, k_w, k_b, k_rel = jax.random.split(key, 5)

    x = jax.random.normal(k_x, (B, N, F_IN), dtype=jnp.float32)
    # binary-ish adjacency
    adj = (jax.random.uniform(k_adj, (B, N, N)) > 0.5).astype(jnp.float32)

    # Deterministic parameter init mirroring reset_parameters():
    # kaiming_uniform_(weight, a=sqrt(5)) -> U(-1/sqrt(fan_in), 1/sqrt(fan_in))
    # with PyTorch fan_in = weight.size(1) = out_features for this layout.
    fan_in = F_OUT
    w_bound = 1.0 / math.sqrt(fan_in)
    weight = jax.random.uniform(
        k_w, (F_IN, F_OUT), minval=-w_bound, maxval=w_bound, dtype=jnp.float32)
    b_bound = 1.0 / math.sqrt(fan_in)
    bias = jax.random.uniform(
        k_b, (F_OUT,), minval=-b_bound, maxval=b_bound, dtype=jnp.float32)

    # TODO(synk): relative_positions_embeddings is referenced in forward() but
    # never defined in __init__; initialized here as a deterministic buffer.
    rel_emb = jax.random.normal(
        k_rel, (MAX_LEN, MAX_LEN, F_OUT), dtype=jnp.float32) * 0.1

    out = graph_convolution(x, adj, weight, rel_emb, bias)
    out = jax.block_until_ready(out)

    ref = reference_forward(x, adj, weight, rel_emb, bias)
    assert out.shape == (B, N, F_OUT)
    # Tolerance accounts for the EUP approximate reciprocal (~1e-4 rel error).
    assert jnp.allclose(out, ref, atol=2e-3, rtol=2e-3), "mismatch vs reference"

    print("KERNEL_OK")
</pallas_src>

<mosaic_0001>
module attributes {stable_mosaic.version = 11 : i64} {
  func.func @gcn_kernel(%arg0: i32, %arg1: i32, %arg2: memref<1x8x16xf32, #tpu.memory_space<vmem>>, %arg3: memref<1x8x1xf32, #tpu.memory_space<vmem>>, %arg4: memref<16x32xf32, #tpu.memory_space<vmem>>, %arg5: memref<8x32xf32, #tpu.memory_space<vmem>>, %arg6: memref<1x32xf32, #tpu.memory_space<vmem>>, %arg7: memref<1x8x32xf32, #tpu.memory_space<vmem>>) attributes {dimension_semantics = [#tpu.dimension_semantics<parallel>, #tpu.dimension_semantics<parallel>], iteration_bounds = array<i64: 1, 2>, scalar_prefetch = 0 : i64, scratch_operands = 0 : i64, tpu.core_type = #tpu.core_type<tc>, window_params = [{transform_indices = @transform_0, window_bounds = array<i64: 1, 8, 16>}, {transform_indices = @transform_1, window_bounds = array<i64: 1, 8, 1>}, {pipeline_mode = #tpu.pipeline_mode<synchronous>, transform_indices = @transform_2, window_bounds = array<i64: 16, 32>}, {transform_indices = @transform_3, window_bounds = array<i64: 8, 32>}, {pipeline_mode = #tpu.pipeline_mode<synchronous>, transform_indices = @transform_4, window_bounds = array<i64: 1, 32>}, {transform_indices = @transform_5, window_bounds = array<i64: 1, 8, 32>}]} {
    %c0 = arith.constant 0 : index
    %c0_0 = arith.constant 0 : index
    %c0_1 = arith.constant 0 : index
    %0 = vector.load %arg2[%c0, %c0_0, %c0_1] : memref<1x8x16xf32, #tpu.memory_space<vmem>>, vector<1x8x16xf32>
    %1 = vector.shape_cast %0 : vector<1x8x16xf32> to vector<8x16xf32>
    %c0_2 = arith.constant 0 : index
    %c0_3 = arith.constant 0 : index
    %2 = vector.load %arg4[%c0_2, %c0_3] : memref<16x32xf32, #tpu.memory_space<vmem>>, vector<16x32xf32>
    %cst = arith.constant dense<0.000000e+00> : vector<8x32xf32>
    %3 = tpu.matmul %1, %2, %cst {dimension_numbers = #tpu.dot_dimension_numbers<[1], [0], [0], [1], [0, 0, 1, 1], [], []>} : vector<8x16xf32>, vector<16x32xf32>, vector<8x32xf32> -> vector<8x32xf32>
    %c0_4 = arith.constant 0 : index
    %c0_5 = arith.constant 0 : index
    %c0_6 = arith.constant 0 : index
    %4 = vector.load %arg3[%c0_4, %c0_5, %c0_6] : memref<1x8x1xf32, #tpu.memory_space<vmem>>, vector<1x8x1xf32>
    %5 = vector.shape_cast %4 : vector<1x8x1xf32> to vector<8x1xf32>
    %c0_7 = arith.constant 0 : index
    %c0_8 = arith.constant 0 : index
    %6 = vector.load %arg5[%c0_7, %c0_8] : memref<8x32xf32, #tpu.memory_space<vmem>>, vector<8x32xf32>
    %c0_9 = arith.constant 0 : index
    %c0_10 = arith.constant 0 : index
    %7 = vector.load %arg6[%c0_9, %c0_10] : memref<1x32xf32, #tpu.memory_space<vmem>>, vector<1x32xf32>
    %cst_11 = arith.constant 1.000000e+00 : f32
    %8 = vector.broadcast %cst_11 : f32 to vector<8x1xf32>
    %9 = arith.addf %5, %8 : vector<8x1xf32>
    %cst_12 = arith.constant 8.000000e+00 : f32
    %10 = vector.broadcast %cst_12 : f32 to vector<8x1xf32>
    %11 = arith.mulf %9, %10 : vector<8x1xf32>
    %12 = tpu.reciprocal %11 {approx = true} : vector<8x1xf32> -> vector<8x1xf32>
    %13 = arith.mulf %5, %12 : vector<8x1xf32>
    %14 = vector.broadcast %13 : vector<8x1xf32> to vector<8x32xf32>
    %15 = arith.mulf %3, %14 : vector<8x32xf32>
    %16 = vector.broadcast %12 : vector<8x1xf32> to vector<8x32xf32>
    %17 = arith.mulf %6, %16 : vector<8x32xf32>
    %18 = arith.addf %15, %17 : vector<8x32xf32>
    %19 = vector.broadcast %7 : vector<1x32xf32> to vector<8x32xf32>
    %20 = arith.addf %18, %19 : vector<8x32xf32>
    %cst_13 = arith.constant 0.000000e+00 : f32
    %21 = vector.broadcast %cst_13 : f32 to vector<8x32xf32>
    %22 = arith.maximumf %20, %21 : vector<8x32xf32>
    %c0_14 = arith.constant 0 : index
    %c0_15 = arith.constant 0 : index
    %c0_16 = arith.constant 0 : index
    %23 = vector.load %arg7[%c0_14, %c0_15, %c0_16] : memref<1x8x32xf32, #tpu.memory_space<vmem>>, vector<1x8x32xf32>
    %24 = vector.shape_cast %23 : vector<1x8x32xf32> to vector<8x32xf32>
    %25 = vector.shape_cast %22 : vector<8x32xf32> to vector<1x8x32xf32>
    tpu.vector_store %arg7[%c0_14, %c0_15, %c0_16], %25 {strides = array<i32>} : memref<1x8x32xf32, #tpu.memory_space<vmem>>, vector<1x8x32xf32>,
    return
  }
  func.func @transform_0(%arg0: i32, %arg1: i32) -> (i32, i32, i32) {
    %c0_i32 = arith.constant 0 : i32
    %c0_i32_0 = arith.constant 0 : i32
    return %arg1, %arg0, %c0_i32 : i32, i32, i32
  }
  func.func @transform_1(%arg0: i32, %arg1: i32) -> (i32, i32, i32) {
    %c0_i32 = arith.constant 0 : i32
    %c0_i32_0 = arith.constant 0 : i32
    return %arg1, %arg0, %c0_i32 : i32, i32, i32
  }
  func.func @transform_2(%arg0: i32, %arg1: i32) -> (i32, i32) {
    %c0_i32 = arith.constant 0 : i32
    %c0_i32_0 = arith.constant 0 : i32
    %c0_i32_1 = arith.constant 0 : i32
    return %c0_i32, %c0_i32_0 : i32, i32
  }
  func.func @transform_3(%arg0: i32, %arg1: i32) -> (i32, i32) {
    %c0_i32 = arith.constant 0 : i32
    %c0_i32_0 = arith.constant 0 : i32
    return %arg0, %c0_i32 : i32, i32
  }
  func.func @transform_4(%arg0: i32, %arg1: i32) -> (i32, i32) {
    %c0_i32 = arith.constant 0 : i32
    %c0_i32_0 = arith.constant 0 : i32
    %c0_i32_1 = arith.constant 0 : i32
    return %c0_i32, %c0_i32_0 : i32, i32
  }
  func.func @transform_5(%arg0: i32, %arg1: i32) -> (i32, i32, i32) {
    %c0_i32 = arith.constant 0 : i32
    %c0_i32_0 = arith.constant 0 : i32
    return %arg1, %arg0, %c0_i32 : i32, i32, i32
  }
}

</mosaic_0001>

<bundles_post_ra>
// kernel: tpu_custom_call.1
= control target key start
LH: loop header
LB: loop body
LE: loop exit
PB: predicated region body
PF: predicated region fallthrough
CT: control target
= control target key end

     0   :  { %10 = vsyncpa [#allocation3], 0  ;;  %s907_s0 = inlined_call_operand.vmem [shape: f32[2,8,16], index: 0, kind: input, shape index: {}]   ;;  %s908_s1 = inlined_call_operand.vmem [shape: f32[2,8,1], index: 1, kind: input, shape index: {}]   ;;  %s909_s2 = inlined_call_operand.hbm [shape: f32[16,32], index: 2, kind: input, shape index: {}]   ;;  %s910_s3 = inlined_call_operand.hbm [shape: f32[8,32], index: 3, kind: input, shape index: {}]   ;;  %s911_s4 = inlined_call_operand.vmem [shape: f32[1,32], index: 4, kind: input, shape index: {}]   ;;  %s912_s5 = inlined_call_operand.hbm [shape: f32[2,8,32], index: 5, kind: output, shape index: {}]  }
   0x1   :  { %11 = vsyncpa [#allocation6], 0 }
   0x2   :  { %12 = vsyncpa [#allocation4], 0 }
   0x3   :  { %14 = vsyncpa [#allocation4 + $0x1], 0  ;;  %s776_s18 = smov 0   ;;  %s778_s19 = smov 0  }
   0x4   :  { %s780_s20 = smov 0   ;;  %s782_s21 = smov 0  }
   0x5   :  { %s784_s22 = smov 0   ;;  %s786_s23 = smov 0  }
   0x6 LB: > { %s493_s24 = sadd.s32 4294967295, %s739_s23   ;;  %s494_s25 = sadd.s32 4294967294, %s739_s23   ;;  %s739_s23 = sphi %s786_s23, %s20_s23   ;;  %s735_s22 = sphi %s784_s22, %s921_s22   ;;  %s731_s21 = sphi %s782_s21, %s920_s21   ;;  %s727_s20 = sphi %s780_s20, %s919_s20   ;;  %s723_s19 = sphi %s778_s19, %s918_s19   ;;  %s719_s18 = sphi %s776_s18, %s917_s18  }
   0x7   : > { %s29_s26 = sadd.s32 1, %s735_s22  ;;  %s165_s27 = sadd.s32 1, %s727_s20 }
   0x8   : > { %p30_p0 = scmp.ge.s32.totalorder %s29_s26, 2  ;;  %p175_p1 = scmp.ne.s32.totalorder %s727_s20, %s723_s19 }
   0x9   : > { %p176_p2 = scmp.eq.s32.totalorder %s493_s24, 1  ;;  %p181_p3 = scmp.ne.s32.totalorder %s723_s19, %s719_s18 }
   0xa   : > { %s923_s26 = smov (%p30_p0, %s29_s26), 0  ;;  %p182_p5 = scmp.eq.s32.totalorder %s494_s25, 1 }
   0xb   : > { %p816_p4 = por %p176_p2, %p175_p1  ;;  %s160_s29 = ssub.s32 %s735_s22, %s923_s26 }
   0xc   : > { %p495_p6 = scmp.ge.s32.totalorder %s739_s23, 1  ;;  %p163_p7 = scmp.eq.s32.totalorder %s160_s29, 0 }
   0xd   : > { %p823_p8 = por %p182_p5, %p181_p3  ;;  %p189_p9 = scmp.lt.s32.totalorder %s739_s23, 3 }
   0xe   : > { %s829_s6 = scalar_select %p163_p7, %s727_s20, %s165_s27  }
   0xf   : > { %p831_p10 = pnand %p495_p6, %p189_p9  ;;  %p835_p11 = scmp.eq.s32.totalorder %s493_s24, 0 }
  0x10   : > { %s200_s11 = sshll.u32 %s909_s2, 4  ;;  %s741_s12 = smov [#allocation2]   ;;  %s201_s11 = int_to_ptr.hbm [resolvable:$true] %s200_s11 }
  0x11   : > { %p520_p12 = pneg %p831_p10  ;;  %s202_s13 = sshll.u32 %s741_s12, 4  ;;  %s203_s13 = int_to_ptr.vmem [resolvable:$true] %s202_s13 }
  0x12   : > { %s217_s16 = sshll.u32 %s910_s3, 4  ;;  %s742_s17 = smov 128   ;;  %s218_s16 = int_to_ptr.hbm [resolvable:$true] %s217_s16 }
  0x13   : > { %p521_p13 = pnand %p835_p11, %p520_p12  ;;  %s743_s24 = smov 8  }
  0x14   : > { %s744_s25 = smov [#allocation5]   ;;  %255 = sbr.rel (%p831_p10) target bundleno = 183 (0xb7), region = 40 }
  0x15   : > { %523 = dma.hbm_to_vmem [thread:$0]  (!%p521_p13), %s201_s11, 256, %s203_s13, [#allocation3], %s742_s17, %s742_s17, %s743_s24  }
  0x16   : > { %s219_s27 = sshll.u32 %s744_s25, 4  ;;  %s220_s27 = int_to_ptr.vmem [resolvable:$true] %s219_s27 }
  0x17   : > { %526 = dma.hbm_to_vmem [thread:$0]  (!%p521_p13), %s218_s16, 128, %s220_s27, [#allocation6]  }
  0x19   : > { %706 = dma.done.wait (%p835_p11), [#allocation3], 256  }
  0x1a   : > { %708 = vsyncadd (%p835_p11), [#allocation3], 4294967040 }
  0x1b   : > { %710 = dma.done.wait (%p835_p11), [#allocation6], 128  }
  0x1c   : > { %712 = vsyncadd (%p835_p11), [#allocation6], 4294967168  ;;  %p298_p0 = scmp.lt.s32.totalorder %s731_s21, 1  ;;  %v745_v0 = vmov 0   ;;  %v314_v1 = vld [vmem:[#allocation2 + $0x8] sm:$0xff]  ;;  %v313_v2 = vld [vmem:[#allocation2] sm:$0xff] }
  0x1d   : > { %589 = vset.pattern.permute.xlu0 %v745_v0  ;;  %333 = vmatpush.msra.mxu0 %v314_v1  ;;  %vm315_vm0 = vcmask 130048   ;;  %s295_s8 = sand.u32 1, %s723_s19   ;;  %v340_v11 = vld [vmem:[#allocation5] sm:$0xff]  ;;  %s507_s16 = sshll.u32 %s731_s21, 3  ;;  %v590_v14 = vld [vmem:[%s911_s4] ss:$0 sm:$0xff] }
  0x1e   : > { %s299_s29 = scalar_select %p298_p0, %s731_s21, 1  ;;  %vm364_vm1 = vcmask 261120  }
  0x1f   : > { %334 = vmatpush.msra.mxu0 %v313_v2  ;;  %s502_s15 = sshll.u32 %s295_s8, 3  ;;  %s367_s21 = scalar_lea.sflag [#allocation4], %s295_s8 }
  0x20   : > { %s503_s7 = sshll.u32 %s299_s29, 3  ;;  %s378_s29 = scalar_lea.hbm %s912_s5, %s507_s16 }
  0x21   : > { %s304_s11 = scalar_lea.vmem %s907_s0, %s503_s7  ;;  %s311_s14 = scalar_lea.vmem %s908_s1, %s503_s7 }
  0x22   : > { %v312_v3 = vld [vmem:[%s304_s11] sm:$0xff]  ;;  %s297_s7 = scalar_lea.vmem [#allocation7], %s502_s15  ;;  %s382_s10 = sshll.u32 %s378_s29, 4  ;;  %s383_s10 = int_to_ptr.hbm [resolvable:$true] %s382_s10 }
  0x23   : > { %v339_v4 = vld [vmem:[%s311_s14] sm:$0xff]  ;;  %505 = vmatmul.msk.f32.vlgmr.msra.gmra.mxu0 %vm315_vm0, %v312_v3  ;;  %s380_s9 = sshll.u32 %s297_s7, 4  ;;  %s667_s11 = sshra.s32 %s383_s10, 4  ;;  %s381_s9 = int_to_ptr.vmem [resolvable:$true] %s380_s9  ;;  %s668_s11 = int_to_ptr.hbm [resolvable:$true] %s667_s11 }
  0x24   : > { %v342_v5 = vadd.f32 1.0, %v339_v4  ;;  %s669_s12 = scalar_lea.hbm %s668_s11, 8  ;;  %s673_s15 = scalar_lea.hbm %s912_s5, 16 }
  0x25   : > { %p670_p1 = scmp.ne.s32.totalorder %s668_s11, %s669_s12  ;;  %p674_p5 = scmp.lt.s32.totalorder %s668_s11, %s912_s5 }
  0x26   : > { %v343_v6 = vmul.f32 8.0, %v342_v5  ;;  %p675_p6 = scmp.lt.s32.totalorder %s673_s15, %s669_s12 }
  0x27   : > { %p671_p2 = pnand %p670_p1, %p816_p4 }
  0x28   : > { %591 = vrcp.f32 %v343_v6  ;;  %p676_p7 = por %p675_p6, %p674_p5 }
  0x29   : > { %p672_p3 = pneg %p671_p2 }
  0x2b   : > { %p677_p9 = pnand %p676_p7, %p672_p3 }
  0x2e   : > { %v592_v7 = vpop.eup %591 }
  0x2f   : > { %v345_v8 = vmul.f32 %v592_v7, %v339_v4 }
  0x31   : > { %348 = vperm.xlu0 %589, %v345_v8  }
  0x39   : > { %354 = vperm.xlu0 %589, %v592_v7  }
  0xa0   : > { %v336_v10 = vpop.f32.mrf.mxu0 }
  0xa3   : > { %v349_v9 = vpop.permute.xlu0 %348 }
  0xa4   : > { %v351_v13 = vmul.f32 %v349_v9, %v336_v10 }
  0xab   : > { %v355_v12 = vpop.permute.xlu0 %354 }
  0xac   : > { %v357_v15 = vmul.f32 %v355_v12, %v340_v11 }
  0xae   : > { %v358_v16 = vadd.f32 %v357_v15, %v351_v13 }
  0xb0   : > { %v362_v17 = vadd.f32 %v590_v14, %v358_v16 }
  0xb2   : > { %v363_v18 = vmax.f32 %v362_v17, 0.0 }
  0xb4   : > { %365 = vst.msk [vmem:[%s297_s7] sm:$0xff] %vm364_vm1, %v363_v18 }
  0xb5   : > { %680 = shalt.err (!%p677_p9)
}
  0xb6   : > { %518 = dma.vmem_to_hbm [thread:$0]  (%p816_p4), %s381_s9, 128, %s383_s10, %s367_s21  }
  0xb7 PF: > { %p535_p10 = scmp.ge.s32.totalorder %s739_s23, 2  ;;  %s394_s8 = sand.u32 1, %s719_s18  }
  0xb8   : > { %s395_s24 = scalar_lea.sflag [#allocation4], %s394_s8 }
  0xb9   : > { %p528_p11 = pnand %p535_p10, %p823_p8 }
  0xbb   : > { %p529_p12 = pneg %p528_p11 }
  0xbd   : > { %714 = dma.done.wait (%p529_p12), %s395_s24, 128  }
  0xbe   : > { %716 = vsyncadd (%p529_p12), %s395_s24, 4294967168  ;;  %s20_s23 = sadd.s32 1, %s739_s23   ;;  %s917_s18 = smov %s723_s19 }
  0xbf   : > { %p17_p13 = scmp.ge.s32.totalorder %s20_s23, 4   ;;  %s918_s19 = smov %s727_s20 }
  0xc0   : > { %s919_s20 = smov %s829_s6  ;;  %s920_s21 = smov %s735_s22 }
  0xc1   : > { %s921_s22 = smov %s923_s26  ;;  %19 = sbr.rel (!%p17_p13) target bundleno = 6 (0x6), region = 88 }
  0xc6   :  { %401 = vsyncpa [#allocation3], 1 }
  0xc7   :  { %403 = vsyncpa [#allocation3 + $0x1], 1 }
  0xc8   :  { %404 = vsyncpa [#allocation6], 1 }
  0xc9   :  { %405 = vsyncpa [#allocation4], 1 }
  0xca   :  { %407 = vsyncpa [#allocation4 + $0x1], 1 }

</bundles_post_ra>
